<compile_context>
chip_gen: v7x
topology: tpu7x:2x2x1
jax: 0.10.0
libtpu: 0.0.40
codegen_flags: <defaults>
</compile_context>

<pallas_src>
import math
import functools

import jax
import jax.numpy as jnp
from jax.experimental import pallas as pl
from jax.experimental.pallas import tpu as pltpu


# ----------------------------- kernel ------------------------------

def _pe_add_kernel(x_ref, pe_ref, o_ref):
    # x block: (rows, B, D); pe block: (rows, 1, D) -> broadcast over the batch dim.
    x = x_ref[...].astype(jnp.float32)
    pe = pe_ref[...].astype(jnp.float32)
    o_ref[...] = (x + pe).astype(o_ref.dtype)


def _pick_row_block(s, b, d, itemsize, target_bytes=2 << 20):
    """Rows per block so one x tile is ~2 MiB (double-buffered in/out stays well under VMEM)."""
    rows = max(1, target_bytes // max(1, b * d * itemsize))
    return int(min(rows, s))


def positional_encoding(x, pe, *, row_block=None):
    """Matches PositionalEncoding.forward: x + pe[:x.shape[0]] (dropout = identity / eval mode).

    x:  (S, B, D)  token embeddings (seq-first, as in the reference usage)
    pe: (max_len, 1, D) positional table
    """
    s, b, d = x.shape
    pe_slice = pe[:s]  # (S, 1, D)

    if row_block is None:
        row_block = _pick_row_block(s, b, d, x.dtype.itemsize)
    ts = max(1, min(int(row_block), s))
    grid = (pl.cdiv(s, ts),)

    # Enough for double-buffered x/out blocks + pe blocks, capped at 32 MiB (safe on v7x).
    tile_bytes = ts * b * d * x.dtype.itemsize
    vmem_bytes = int(min(32 * 1024 * 1024, max(4 * 1024 * 1024, 8 * tile_bytes)))

    return pl.pallas_call(
        _pe_add_kernel,
        out_shape=jax.ShapeDtypeStruct(x.shape, x.dtype),
        grid_spec=pltpu.PrefetchScalarGridSpec(
            num_scalar_prefetch=0,
            grid=grid,
            in_specs=[
                pl.BlockSpec((ts, b, d), lambda i: (i, 0, 0)),   # x rows
                pl.BlockSpec((ts, 1, d), lambda i: (i, 0, 0)),   # matching pe rows
            ],
            out_specs=pl.BlockSpec((ts, b, d), lambda i: (i, 0, 0)),
        ),
        compiler_params=pltpu.CompilerParams(
            dimension_semantics=("parallel",),   # megacore sharding on v7x
            vmem_limit_bytes=vmem_bytes,
        ),
    )(x, pe_slice)


# ----------------------------- positional table (matches the PyTorch __init__) ---------------

def make_pos_encoding(max_len, dim_model):
    positions = jnp.arange(max_len, dtype=jnp.float32)[:, None]
    division_term = jnp.exp(
        jnp.arange(0, dim_model, 2, dtype=jnp.float32) * (-math.log(10000.0) / dim_model))
    pe = jnp.zeros((max_len, dim_model), jnp.float32)
    pe = pe.at[:, 0::2].set(jnp.sin(positions * division_term))
    pe = pe.at[:, 1::2].set(jnp.cos(positions * division_term))
    return pe[:, None, :]  # unsqueeze(0).transpose(0, 1) -> (max_len, 1, dim_model)


# TODO(synk): nn.Dropout in training mode (stochastic masking) is not implemented; eval-mode
# identity is used. A training path would seed pltpu.prng_seed / prng_random_bits per block.


# ----------------------------- main ------------------------------

if __name__ == "__main__":
    DIM_MODEL = 128     # lane-dense last dim
    MAX_LEN = 64
    BATCH = 4
    SEQ = 16

    key = jax.random.PRNGKey(0)
    k1, k2 = jax.random.split(key)

    pe = make_pos_encoding(MAX_LEN, DIM_MODEL)
    x = jax.random.normal(k1, (SEQ, BATCH, DIM_MODEL), jnp.float32)

    fwd = jax.jit(functools.partial(positional_encoding, row_block=8))  # 2 grid steps at SEQ=16

    out = jax.block_until_ready(fwd(x, pe))
    ref = x + pe[:SEQ]
    assert out.shape == x.shape, out.shape
    assert bool(jnp.allclose(out, ref, atol=1e-6, rtol=1e-6))

    # Non-divisible sequence length exercises the cdiv grid / masked tail block.
    x2 = jax.random.normal(k2, (13, BATCH, DIM_MODEL), jnp.float32)
    out2 = jax.block_until_ready(fwd(x2, pe))
    assert bool(jnp.allclose(out2, x2 + pe[:13], atol=1e-6, rtol=1e-6))

    print("KERNEL_OK")
</pallas_src>

<mosaic_0001>
module attributes {stable_mosaic.version = 11 : i64} {
  func.func @_pe_add_kernel(%arg0: i32, %arg1: memref<8x4x128xf32, #tpu.memory_space<vmem>>, %arg2: memref<8x1x128xf32, #tpu.memory_space<vmem>>, %arg3: memref<8x4x128xf32, #tpu.memory_space<vmem>>) attributes {dimension_semantics = [#tpu.dimension_semantics<parallel>], iteration_bounds = array<i64: 2>, scalar_prefetch = 0 : i64, scratch_operands = 0 : i64, tpu.core_type = #tpu.core_type<tc>, window_params = [{transform_indices = @transform_0, window_bounds = array<i64: 8, 4, 128>}, {transform_indices = @transform_1, window_bounds = array<i64: 8, 1, 128>}, {transform_indices = @transform_2, window_bounds = array<i64: 8, 4, 128>}]} {
    %c0 = arith.constant 0 : index
    %c0_0 = arith.constant 0 : index
    %c0_1 = arith.constant 0 : index
    %0 = vector.load %arg1[%c0, %c0_0, %c0_1] : memref<8x4x128xf32, #tpu.memory_space<vmem>>, vector<8x4x128xf32>
    %c0_2 = arith.constant 0 : index
    %c0_3 = arith.constant 0 : index
    %c0_4 = arith.constant 0 : index
    %1 = vector.load %arg2[%c0_2, %c0_3, %c0_4] : memref<8x1x128xf32, #tpu.memory_space<vmem>>, vector<8x1x128xf32>
    %2 = vector.broadcast %1 : vector<8x1x128xf32> to vector<8x4x128xf32>
    %3 = arith.addf %0, %2 : vector<8x4x128xf32>
    %c0_5 = arith.constant 0 : index
    %c0_6 = arith.constant 0 : index
    %c0_7 = arith.constant 0 : index
    %4 = vector.load %arg3[%c0_5, %c0_6, %c0_7] : memref<8x4x128xf32, #tpu.memory_space<vmem>>, vector<8x4x128xf32>
    tpu.vector_store %arg3[%c0_5, %c0_6, %c0_7], %3 {strides = array<i32>} : memref<8x4x128xf32, #tpu.memory_space<vmem>>, vector<8x4x128xf32>,
    return
  }
  func.func @transform_0(%arg0: i32) -> (i32, i32, i32) {
    %c0_i32 = arith.constant 0 : i32
    %c0_i32_0 = arith.constant 0 : i32
    %c0_i32_1 = arith.constant 0 : i32
    return %arg0, %c0_i32, %c0_i32_0 : i32, i32, i32
  }
  func.func @transform_1(%arg0: i32) -> (i32, i32, i32) {
    %c0_i32 = arith.constant 0 : i32
    %c0_i32_0 = arith.constant 0 : i32
    %c0_i32_1 = arith.constant 0 : i32
    return %arg0, %c0_i32, %c0_i32_0 : i32, i32, i32
  }
  func.func @transform_2(%arg0: i32) -> (i32, i32, i32) {
    %c0_i32 = arith.constant 0 : i32
    %c0_i32_0 = arith.constant 0 : i32
    %c0_i32_1 = arith.constant 0 : i32
    return %arg0, %c0_i32, %c0_i32_0 : i32, i32, i32
  }
}

</mosaic_0001>

<bundles_post_ra>
// kernel: positional_encoding.1
= control target key start
LH: loop header
LB: loop body
LE: loop exit
PB: predicated region body
PF: predicated region fallthrough
CT: control target
= control target key end

     0   :  { %7 = vsyncpa [#allocation3], 0  ;;  %s752_s0 = inlined_call_operand.hbm [shape: f32[16,4,128], index: 0, kind: input, shape index: {}]   ;;  %s753_s1 = inlined_call_operand.vmem [shape: f32[16,1,128], index: 1, kind: input, shape index: {}]   ;;  %s754_s2 = inlined_call_operand.hbm [shape: f32[16,4,128], index: 2, kind: output, shape index: {}]  }
   0x1   :  { %9 = vsyncpa [#allocation3 + $0x1], 0 }
   0x2   :  { %10 = vsyncpa [#allocation4], 0 }
   0x3   :  { %12 = vsyncpa [#allocation4 + $0x1], 0  ;;  %s553_s9 = smov 0   ;;  %s555_s10 = smov 0  }
   0x4   :  { %s557_s11 = smov 0   ;;  %s559_s12 = smov 0  }
   0x5 LB: > { %s574_s13 = sadd.s32 4294967295, %s530_s12   ;;  %s359_s14 = sadd.s32 4294967294, %s530_s12   ;;  %s530_s12 = sphi %s559_s12, %s767_s12   ;;  %s526_s11 = sphi %s557_s11, %s766_s11   ;;  %s522_s10 = sphi %s555_s10, %s765_s10   ;;  %s518_s9 = sphi %s553_s9, %s764_s9  }
   0x6   : > { %s578_s15 = sadd.s32 1, %s530_s12   ;;  %s25_s16 = sadd.s32 1, %s526_s11 }
   0x7   : > { %s22_s17 = ssub.s32 %s530_s12, %s578_s15  ;;  %p32_p0 = scmp.ne.s32.totalorder %s526_s11, %s522_s10 }
   0x8   : > { %p23_p1 = scmp.eq.s32.totalorder %s22_s17, 0  ;;  %p33_p2 = scmp.eq.s32.totalorder %s530_s12, 0 }
   0x9   : > { %p38_p3 = scmp.ne.s32.totalorder %s522_s10, %s518_s9  ;;  %p39_p4 = scmp.eq.s32.totalorder %s574_s13, 0 }
   0xa   : > { %s590_s18 = scalar_select %p23_p1, %s526_s11, %s25_s16  }
   0xb   : > { %p592_p5 = por %p33_p2, %p32_p0  ;;  %p596_p6 = por %p39_p4, %p38_p3 }
   0xc   : > { %p88_p7 = scmp.eq.s32.totalorder %s574_s13, 1  ;;  %p94_p8 = scmp.eq.s32.totalorder %s359_s14, 1 }
   0xd   : > { %p396_p10 = scmp.lt.s32.totalorder %s530_s12, 2  ;;  %s114_s23 = sand.u32 1, %s526_s11  }
   0xe   : > { %p603_p11 = por %p88_p7, %p32_p0  ;;  %p607_p12 = por %p94_p8, %p38_p3 }
   0xf   : > { %s382_s24 = sshll.u32 %s530_s12, 9  ;;  %s362_s25 = sshll.u32 %s114_s23, 5 }
  0x10   : > { %s758_s21 = scalar_select %p603_p11, 1, 0 }
  0x11   : > { %s759_s22 = scalar_select %p607_p12, 1, 0 }
  0x12   : > { %s616_s28 = scalar_lea.hbm %s752_s0, %s382_s24  ;;  %s118_s29 = scalar_lea.vmem [#allocation2], %s362_s25 }
  0x13   : > { %s125_s30 = sshll.u32 %s118_s29, 4  ;;  %p620_p13 = pnand %p396_p10, %p592_p5  ;;  %s624_s30 = int_to_ptr.vmem [resolvable:$true] %s125_s30 }
  0x14   : > { %s626_s4 = scalar_lea.sflag [#allocation3], %s114_s23  ;;  %s434_s5 = scalar_lea.hbm %s616_s28, 512 }
  0x15   : > { %p435_p0 = scmp.ne.s32.totalorder %s616_s28, %s434_s5  ;;  %p436_p1 = pneg %p620_p13 }
  0x16   : > { %s439_s8 = scalar_lea.hbm %s752_s0, 1024  ;;  %p440_p4 = scmp.lt.u32.totalorder %s616_s28, %s752_s0 }
  0x17   : > { %p437_p2 = pnand %p436_p1, %p435_p0  ;;  %p441_p5 = scmp.lt.u32.totalorder %s439_s8, %s434_s5 }
  0x18   : > { %p443_p8 = scmp.lt.u32.totalorder %s434_s5, %s616_s28 }
  0x19   : > { %p438_p3 = pneg %p437_p2  ;;  %p442_p7 = por %p441_p5, %p440_p4 }
  0x1b   : > { %p444_p10 = por %p443_p8, %p442_p7 }
  0x1d   : > { %p445_p9 = pnand %p444_p10, %p438_p3 }
  0x1f   : > { %448 = shalt.err (!%p445_p9)
}
  0x20   : > { %s449_s17 = scalar_lea.vmem %s624_s30, 512  ;;  %s532_s19 = smov [#allocation2]  }
  0x21   : > { %p450_p0 = scmp.ne.s32.totalorder %s624_s30, %s449_s17  ;;  %s454_s23 = sshll.u32 %s532_s19, 4  ;;  %s455_s23 = int_to_ptr.vmem [resolvable:$false] %s454_s23 }
  0x22   : > { %s456_s24 = scalar_lea.vmem %s455_s23, 1024  ;;  %p457_p11 = scmp.lt.s32.totalorder %s624_s30, %s455_s23 }
  0x23   : > { %p452_p2 = pnand %p450_p0, %p436_p1  ;;  %p458_p4 = scmp.lt.s32.totalorder %s456_s24, %s449_s17 }
  0x25   : > { %p453_p12 = pneg %p452_p2  ;;  %p459_p5 = por %p458_p4, %p457_p11 }
  0x27   : > { %p460_p7 = pnand %p459_p5, %p453_p12 }
  0x29   : > { %463 = shalt.err (!%p460_p7)
}
  0x2a   : > { %s533_s25 = smov 64   ;;  %s534_s26 = smov 4  }
  0x2b   : > { %391 = dma.hbm_to_vmem [thread:$0]  (!%p620_p13), %s616_s28, 512, %s624_s30, %s626_s4, %s533_s25, %s533_s25, %s534_s26  }
  0x2c   : > { %p365_p9 = scmp.ge.s32.totalorder %s530_s12, 1  ;;  %p141_p1 = scmp.lt.s32.totalorder %s530_s12, 3 }
  0x2e   : > { %p142_p3 = pnand %p365_p9, %p141_p1 }
  0x2f   : > { %s657_s27 = sand.u32 (!%p142_p3), 1, %s522_s10  }
  0x30   : > { %145 = sbr.rel (%p142_p3) target bundleno = 86 (0x56), region = 28  ;;  %s366_s29 = sshll.u32 (!%p142_p3), %s657_s27, 5 }
  0x31   : > { %s148_s5 = scalar_lea.sflag (!%p142_p3), [#allocation3], %s657_s27  ;;  %s661_s6 = scalar_lea.vmem (!%p142_p3), [#allocation2], %s366_s29 }
  0x37   : > { %509 = dma.done.wait (%p596_p6), %s148_s5, 512  }
  0x38   : > { %511 = vsyncadd (%p596_p6), %s148_s5, 4294966784  ;;  %s368_s28 = sshll.u32 %s574_s13, 3  ;;  %s673_s20 = scalar_lea.vmem [#allocation5], %s366_s29  ;;  %v183_v0 = vld [vmem:[%s661_s6] sm:$0xf] }
  0x39   : > { %p178_p11 = scmp.lt.s32.totalorder %s368_s28, 15  ;;  %s277_s7 = sshll.u32 %s673_s20, 4  ;;  %v184_v2 = vld [vmem:[%s661_s6 + $0x4] sm:$0xf]  ;;  %v185_v5 = vld [vmem:[%s661_s6 + $0x8] sm:$0xf]  ;;  %s690_s7 = int_to_ptr.vmem [resolvable:$true] %s277_s7 }
  0x3a   : > { %s383_s8 = sshll.u32 %s574_s13, 9  ;;  %v186_v9 = vld [vmem:[%s661_s6 + $0xc] sm:$0xf]  ;;  %v187_v11 = vld [vmem:[%s661_s6 + $0x10] sm:$0xf]  ;;  %s264_s19 = scalar_lea.sflag [#allocation4], %s657_s27 }
  0x3b   : > { %s769_s28 = smov (!%p178_p11, %s368_s28), 15  ;;  %v188_v14 = vld [vmem:[%s661_s6 + $0x14] sm:$0xf]  ;;  %v189_v18 = vld [vmem:[%s661_s6 + $0x18] sm:$0xf]  ;;  %s706_s17 = scalar_lea.hbm %s754_s2, %s383_s8 }
  0x3c   : > { %s671_s4 = scalar_lea.vmem %s753_s1, %s769_s28  ;;  %v190_v20 = vld [vmem:[%s661_s6 + $0x1c] sm:$0xf]  ;;  %s464_s23 = scalar_lea.vmem %s690_s7, 512 }
  0x3d   : > { %v369_v1 = vld [vmem:[%s671_s4] ss:$0 sm:$0xff]  ;;  %v370_v4 = vld [vmem:[%s671_s4 + $0x1] ss:$0 sm:$0xff]  ;;  %v371_v6 = vld [vmem:[%s671_s4 + $0x2] ss:$0 sm:$0xff]  ;;  %p465_p6 = scmp.ne.s32.totalorder %s690_s7, %s464_s23 }
  0x3e   : > { %v247_v3 = vadd.f32 %v369_v1, %v183_v0  ;;  %v248_v7 = vadd.f32 %v370_v4, %v184_v2  ;;  %v249_v8 = vadd.f32 %v371_v6, %v185_v5  ;;  %v372_v10 = vld [vmem:[%s671_s4 + $0x3] ss:$0 sm:$0xff]  ;;  %v373_v13 = vld [vmem:[%s671_s4 + $0x4] ss:$0 sm:$0xff]  ;;  %v374_v15 = vld [vmem:[%s671_s4 + $0x5] ss:$0 sm:$0xff] }
  0x3f   : > { %v250_v12 = vadd.f32 %v372_v10, %v186_v9  ;;  %v251_v16 = vadd.f32 %v373_v13, %v187_v11  ;;  %v252_v17 = vadd.f32 %v374_v15, %v188_v14  ;;  %v375_v19 = vld [vmem:[%s671_s4 + $0x6] ss:$0 sm:$0xff]  ;;  %v376_v22 = vld [vmem:[%s671_s4 + $0x7] ss:$0 sm:$0xff]  ;;  %p761_p12 = scmp.ne.s32.totalorder %s758_s21, 0  ;;  %s535_s24 = smov [#allocation5]  }
  0x40   : > { %255 = vst [vmem:[%s673_s20] sm:$0xf] %v247_v3  ;;  %256 = vst [vmem:[%s673_s20 + $0x4] sm:$0xf] %v248_v7  ;;  %v253_v21 = vadd.f32 %v375_v19, %v189_v18  ;;  %v254_v23 = vadd.f32 %v376_v22, %v190_v20  ;;  %s468_s25 = sshll.u32 %s535_s24, 4  ;;  %s469_s25 = int_to_ptr.vmem [resolvable:$false] %s468_s25 }
  0x41   : > { %257 = vst [vmem:[%s673_s20 + $0x8] sm:$0xf] %v249_v8  ;;  %258 = vst [vmem:[%s673_s20 + $0xc] sm:$0xf] %v250_v12  ;;  %p466_p13 = pnand %p465_p6, %p761_p12  ;;  %s470_s26 = scalar_lea.vmem %s469_s25, 1024 }
  0x42   : > { %259 = vst [vmem:[%s673_s20 + $0x10] sm:$0xf] %v251_v16  ;;  %260 = vst [vmem:[%s673_s20 + $0x14] sm:$0xf] %v252_v17  ;;  %p471_p10 = scmp.lt.s32.totalorder %s690_s7, %s469_s25  ;;  %p472_p0 = scmp.lt.s32.totalorder %s470_s26, %s464_s23 }
  0x43   : > { %261 = vst [vmem:[%s673_s20 + $0x18] sm:$0xf] %v253_v21  ;;  %262 = vst [vmem:[%s673_s20 + $0x1c] sm:$0xf] %v254_v23  ;;  %p467_p8 = pneg %p466_p13 }
  0x44   : > { %p473_p2 = por %p472_p0, %p471_p10 }
  0x46   : > { %p474_p4 = pnand %p473_p2, %p467_p8 }
  0x48   : > { %477 = shalt.err (!%p474_p4)
}
  0x49   : > { %s478_s13 = scalar_lea.hbm %s706_s17, 512  ;;  %s482_s6 = scalar_lea.hbm %s754_s2, 1024 }
  0x4a   : > { %p479_p5 = scmp.ne.s32.totalorder %s706_s17, %s478_s13  ;;  %p483_p1 = scmp.lt.u32.totalorder %s706_s17, %s754_s2 }
  0x4b   : > { %p484_p3 = scmp.lt.u32.totalorder %s482_s6, %s478_s13  ;;  %p486_p6 = scmp.lt.u32.totalorder %s478_s13, %s706_s17 }
  0x4c   : > { %p480_p7 = pnand %p479_p5, %p761_p12 }
  0x4d   : > { %p485_p11 = por %p484_p3, %p483_p1 }
  0x4e   : > { %p481_p9 = pneg %p480_p7 }
  0x4f   : > { %p487_p13 = por %p486_p6, %p485_p11 }
  0x51   : > { %p488_p8 = pnand %p487_p13, %p481_p9 }
  0x53   : > { %491 = shalt.err (!%p488_p8)
}
  0x54   : > { %s536_s3 = smov 64   ;;  %s537_s4 = smov 4  }
  0x55   : > { %386 = dma.vmem_to_hbm [thread:$0]  (%p761_p12), %s690_s7, 512, %s706_s17, %s264_s19, %s536_s3, %s536_s3, %s537_s4  }
  0x56 PF: > { %s292_s20 = sand.u32 1, %s518_s9   ;;  %p762_p10 = scmp.ne.s32.totalorder %s759_s22, 0 }
  0x57   : > { %p763_p0 = scmp.ge.s32.totalorder %s530_s12, 2  ;;  %s293_s8 = scalar_lea.sflag [#allocation4], %s292_s20 }
  0x59   : > { %p393_p2 = pnand %p763_p0, %p762_p10 }
  0x5b   : > { %513 = dma.done.wait (!%p393_p2), %s293_s8, 512  }
  0x5c   : > { %515 = vsyncadd (!%p393_p2), %s293_s8, 4294966784  ;;  %p15_p4 = scmp.ge.s32.totalorder %s578_s15, 4   ;;  %s764_s9 = smov %s522_s10 }
  0x5d   : > { %s765_s10 = smov %s526_s11  ;;  %s766_s11 = smov %s590_s18 }
  0x5e   : > { %s767_s12 = smov %s578_s15  ;;  %17 = sbr.rel (!%p15_p4) target bundleno = 5 (0x5), region = 76 }
  0x65   :  { %298 = vsyncpa [#allocation3], 1 }
  0x66   :  { %300 = vsyncpa [#allocation3 + $0x1], 1 }
  0x67   :  { %301 = vsyncpa [#allocation4], 1 }
  0x68   :  { %303 = vsyncpa [#allocation4 + $0x1], 1 }

</bundles_post_ra>
